<compile_context>
chip_gen: v7x
topology: tpu7x:2x2x1
jax: 0.10.0
libtpu: 0.0.40
codegen_flags: <defaults>
</compile_context>

<pallas_src>
import functools

import jax
import jax.numpy as jnp
from jax.experimental import pallas as pl
from jax.experimental.pallas import tpu as pltpu

EPS = 1e-5
C_LANE = 128   # channel axis zero-padded to the 128-lane width
W_HALO = 8     # left halo width -> interior W writes start 8-sublane aligned


# ----------------------------------------------------------------------------
# One-time probe: which way does pltpu.roll rotate the lane axis?
# (Keeps the wrapper-side weight packing consistent with the in-kernel
#  rotation regardless of the rotate-direction convention.)
# ----------------------------------------------------------------------------
def _roll_probe_kernel(x_ref, o_ref):
    o_ref[...] = pltpu.roll(x_ref[...], shift=1, axis=1)


@functools.lru_cache(maxsize=1)
def _roll_shifts_up():
    """True iff pltpu.roll(+s) moves lane l -> lane (l+s) % 128 (jnp.roll)."""
    x = jnp.zeros((8, C_LANE), jnp.float32).at[:, 0].set(1.0)
    r = pl.pallas_call(
        _roll_probe_kernel,
        out_shape=jax.ShapeDtypeStruct((8, C_LANE), jnp.float32),
    )(x)
    return bool(jax.device_get(r)[0, 1] == 1.0)


# ----------------------------------------------------------------------------
# Fused BasicBlock kernel
# ----------------------------------------------------------------------------
def basic_block_kernel(
    x_ref,            # (B, H, W, C)   bf16  channel-padded input (no spatial pad)
    w1_ref,           # (C, C)         bf16  conv1, 9 taps lane-packed along K
    w2_ref,           # (C, C)         bf16  conv2, 9 taps lane-packed along K
    ws_ref,           # (C, C)         bf16  1x1 shortcut conv
    g1_ref, b1_ref,   # (1, C) f32
    g2_ref, b2_ref,   # (1, C) f32
    gs_ref, bs_ref,   # (1, C) f32
    out_ref,          # (B, H, W, C)   bf16  lane-dense output
    pad_ref,          # scratch VMEM (B, H+2, W_PAD, C) bf16, shared by both convs
    *, B, H, W, C, cin1, cin2,
):
    M = B * H * W
    inv_m = 1.0 / M

    def bn_fold(acc, gamma, beta):
        # Single-pass batch stats (biased variance), folded into one FMA:
        # y = acc * scale + shift.  Padded lanes: gamma == 0 => scale == 0.
        s = jnp.sum(acc, axis=0, keepdims=True)
        ss = jnp.sum(acc * acc, axis=0, keepdims=True)
        mean = s * inv_m
        var = jnp.maximum(ss * inv_m - mean * mean, 0.0)
        scale = gamma * jax.lax.rsqrt(var + EPS)          # rsqrt -> EUP slot
        shift = beta - mean * scale
        return scale, shift

    def conv3x3_packed(w_ref, cin):
        # Lane-pack the 3x3 im2col into one (M, C) LHS: tap t's (zero-padded)
        # channels are rotated to the disjoint lane range starting at t*cin;
        # every other lane of a rotated patch is zero, so a plain add packs
        # them.  One lane-dense matmul replaces 9 accumulator RMW passes.
        lhs = None
        for kh in range(3):
            for kw in range(3):
                t = kh * 3 + kw
                patch = pad_ref[:, kh:kh + H,
                                W_HALO - 1 + kw:W_HALO - 1 + kw + W, :]
                patch = patch.reshape(M, C)
                if t:
                    patch = pltpu.roll(patch, shift=t * cin, axis=1)
                lhs = patch if lhs is None else lhs + patch
        return jnp.dot(lhs, w_ref[...], preferred_element_type=jnp.float32)

    # Zero the padded scratch once with one big unmasked store; the halo stays
    # zero across both convs because only the interior is rewritten.
    pad_ref[...] = jnp.zeros(pad_ref.shape, pad_ref.dtype)

    # ---- conv1 (3x3, stride 1, pad 1) + bn1 + relu -------------------------
    pad_ref[:, 1:H + 1, W_HALO:W_HALO + W, :] = x_ref[...]   # aligned interior
    acc1 = conv3x3_packed(w1_ref, cin1)
    s1, t1 = bn_fold(acc1, g1_ref[...], b1_ref[...])
    y1 = jnp.maximum(acc1 * s1 + t1, 0.0)

    # ---- conv2 (3x3, stride 1, pad 1) + bn2 --------------------------------
    pad_ref[:, 1:H + 1, W_HALO:W_HALO + W, :] = (
        y1.astype(pad_ref.dtype).reshape(B, H, W, C))
    acc2 = conv3x3_packed(w2_ref, cin2)
    s2, t2 = bn_fold(acc2, g2_ref[...], b2_ref[...])

    # ---- shortcut: 1x1 conv + bn (reads the unpadded input ref directly) ---
    sc = jnp.dot(x_ref[...].reshape(M, C), ws_ref[...],
                 preferred_element_type=jnp.float32)
    ss_, ts_ = bn_fold(sc, gs_ref[...], bs_ref[...])

    # ---- residual add + relu, lane-dense bf16 store ------------------------
    out = jnp.maximum((acc2 * s2 + t2) + (sc * ss_ + ts_), 0.0)
    out_ref[...] = out.astype(out_ref.dtype).reshape(B, H, W, C)


# ----------------------------------------------------------------------------
# Wrapper
# ----------------------------------------------------------------------------
def _pad_channels(a, target, axis=-1):
    pads = [(0, 0)] * a.ndim
    pads[axis] = (0, target - a.shape[axis])
    return jnp.pad(a, pads)


def basic_block_forward(x_nchw, params):
    """Forward of BasicBlock(in_planes, planes, stride=1) with conv+BN shortcut.

    x_nchw: (B, Cin, H, W) float32 (PyTorch layout). Returns (B, planes, H, W) f32.
    """
    B, Cin, H, W = x_nchw.shape
    P = params["w1"].shape[-1]
    C = C_LANE
    # TODO(synk): stride != 1 is not supported by this kernel.
    assert 9 * Cin <= C and 9 * P <= C, (
        "toy-shape K packing needs 9*channels <= 128; use the K=9*128 "
        "concatenated-im2col path for wider blocks")
    W_PAD = W_HALO + W + W_HALO   # >= W_HALO + W + 1, keeps stores tile-aligned

    roll_up = _roll_shifts_up()

    def tap_base(t, cin):
        # K row / lane where tap t's channel 0 lands after the in-kernel roll.
        return (t * cin) % C if roll_up else (-t * cin) % C

    def pack_conv3x3(w):                  # (3,3,ci,co) -> (C, C) bf16, K-packed
        ci, co = w.shape[2], w.shape[3]
        wp = jnp.zeros((C, C), jnp.float32)
        for kh in range(3):
            for kw in range(3):
                b0 = tap_base(kh * 3 + kw, ci)
                wp = wp.at[b0:b0 + ci, :co].set(w[kh, kw])
        return wp.astype(jnp.bfloat16)

    def pack_conv1x1(w):                  # (ci, co) -> (C, C) bf16
        ci, co = w.shape
        return jnp.zeros((C, C), jnp.float32).at[:ci, :co].set(w).astype(jnp.bfloat16)

    def prep_bn(v):                       # (1, p) -> (1, C) f32
        # Zero-padding gamma (not ones) is load-bearing: it forces scale == 0
        # on the padded lanes so rsqrt(eps) never leaks into real channels.
        return _pad_channels(v.astype(jnp.float32), C)

    # NCHW -> NHWC, zero-pad channels to 128 lanes, bf16 for the MXU.
    x = _pad_channels(jnp.transpose(x_nchw, (0, 2, 3, 1)), C).astype(jnp.bfloat16)

    kernel = functools.partial(basic_block_kernel, B=B, H=H, W=W, C=C,
                               cin1=Cin, cin2=P)
    vmem = pl.BlockSpec(memory_space=pltpu.MemorySpace.VMEM)

    out_nhwc = pl.pallas_call(
        kernel,
        out_shape=jax.ShapeDtypeStruct((B, H, W, C), jnp.bfloat16),
        in_specs=[vmem] * 10,
        out_specs=vmem,
        scratch_shapes=[pltpu.VMEM((B, H + 2, W_PAD, C), jnp.bfloat16)],
    )(
        x,
        pack_conv3x3(params["w1"]), pack_conv3x3(params["w2"]),
        pack_conv1x1(params["ws"]),
        prep_bn(params["g1"]), prep_bn(params["b1"]),
        prep_bn(params["g2"]), prep_bn(params["b2"]),
        prep_bn(params["gs"]), prep_bn(params["bs"]),
    )
    # Drop padded channels, upcast, return PyTorch NCHW layout.
    return jnp.transpose(out_nhwc[:, :, :, :P].astype(jnp.float32), (0, 3, 1, 2))


# ----------------------------------------------------------------------------
# Pure-JAX f32 reference (identical forward semantics) and a smoke test
# ----------------------------------------------------------------------------
def basic_block_reference(x_nchw, params):
    x = jnp.transpose(x_nchw, (0, 2, 3, 1)).astype(jnp.float32)

    def conv3x3(a, w):
        return jax.lax.conv_general_dilated(
            a, w, window_strides=(1, 1), padding=((1, 1), (1, 1)),
            dimension_numbers=("NHWC", "HWIO", "NHWC"))

    def bn(a, g, b):
        m = jnp.mean(a, axis=(0, 1, 2), keepdims=True)
        v = jnp.mean((a - m) ** 2, axis=(0, 1, 2), keepdims=True)
        return (a - m) * jax.lax.rsqrt(v + EPS) * g.reshape(1, 1, 1, -1) \
            + b.reshape(1, 1, 1, -1)

    y = jax.nn.relu(bn(conv3x3(x, params["w1"]), params["g1"], params["b1"]))
    y = bn(conv3x3(y, params["w2"]), params["g2"], params["b2"])
    sc = bn(jnp.einsum("bhwc,cp->bhwp", x, params["ws"]),
            params["gs"], params["bs"])
    return jnp.transpose(jax.nn.relu(y + sc), (0, 3, 1, 2))


def init_params(key, in_planes, planes):
    ks = jax.random.split(key, 9)
    return {
        # conv weights stored HWIO (deterministic synthetic init)
        "w1": 0.1 * jax.random.normal(ks[0], (3, 3, in_planes, planes), jnp.float32),
        "w2": 0.1 * jax.random.normal(ks[1], (3, 3, planes, planes), jnp.float32),
        "ws": 0.1 * jax.random.normal(ks[2], (in_planes, planes), jnp.float32),
        # BatchNorm affine params (gamma, beta) per BN layer
        "g1": 1.0 + 0.05 * jax.random.normal(ks[3], (1, planes), jnp.float32),
        "b1": 0.05 * jax.random.normal(ks[4], (1, planes), jnp.float32),
        "g2": 1.0 + 0.05 * jax.random.normal(ks[5], (1, planes), jnp.float32),
        "b2": 0.05 * jax.random.normal(ks[6], (1, planes), jnp.float32),
        "gs": 1.0 + 0.05 * jax.random.normal(ks[7], (1, planes), jnp.float32),
        "bs": 0.05 * jax.random.normal(ks[8], (1, planes), jnp.float32),
    }


if __name__ == "__main__":
    key = jax.random.PRNGKey(0)
    k_x, k_p = jax.random.split(key)

    B, Cin, H, W = 2, 4, 16, 16
    planes = 8  # in_planes != planes -> conv+BN shortcut path is exercised

    x = jax.random.normal(k_x, (B, Cin, H, W), jnp.float32)
    params = init_params(k_p, Cin, planes)

    out = jax.block_until_ready(basic_block_forward(x, params))
    ref = jax.block_until_ready(basic_block_reference(x, params))

    assert out.shape == (B, planes, H, W)
    assert bool(jnp.all(jnp.isfinite(out)))
    assert bool(jnp.all(out >= 0.0))            # final ReLU
    max_err = float(jnp.max(jnp.abs(out - ref)))
    # bf16 datapath (inputs, weights, intermediates and the stored output).
    assert max_err < 1e-1, f"mismatch vs f32 reference: max abs err {max_err}"
    print("KERNEL_OK")
</pallas_src>

<mosaic_0001>
module attributes {stable_mosaic.version = 11 : i64} {
  func.func @_roll_probe_kernel(%arg0: memref<8x128xf32, #tpu.memory_space<vmem>>, %arg1: memref<8x128xf32, #tpu.memory_space<vmem>>) attributes {dimension_semantics = [], scalar_prefetch = 0 : i64, scratch_operands = 0 : i64, tpu.core_type = #tpu.core_type<tc>} {
    %c0 = arith.constant 0 : index
    %c0_0 = arith.constant 0 : index
    %0 = vector.load %arg0[%c0, %c0_0] : memref<8x128xf32, #tpu.memory_space<vmem>>, vector<8x128xf32>
    %c1_i32 = arith.constant 1 : i32
    %1 = tpu.dynamic_rotate %0 by %c1_i32 dim 1 : vector<8x128xf32>, i32 -> vector<8x128xf32>
    %c0_1 = arith.constant 0 : index
    %c0_2 = arith.constant 0 : index
    %2 = vector.load %arg1[%c0_1, %c0_2] : memref<8x128xf32, #tpu.memory_space<vmem>>, vector<8x128xf32>
    tpu.vector_store %arg1[%c0_1, %c0_2], %1 {strides = array<i32>} : memref<8x128xf32, #tpu.memory_space<vmem>>, vector<8x128xf32>,
    return
  }
}

</mosaic_0001>

<bundles_post_ra>
// kernel: tpu_custom_call.1
= control target key start
LH: loop header
LB: loop body
LE: loop exit
PB: predicated region body
PF: predicated region fallthrough
CT: control target
= control target key end

     0   :  { %6 = vsyncpa [#allocation3], 0  ;;  %s128_s0 = inlined_call_operand.hbm [shape: f32[8,128], index: 0, kind: input, shape index: {}]   ;;  %s129_s1 = inlined_call_operand.hbm [shape: f32[8,128], index: 1, kind: output, shape index: {}]  }
   0x1   :  { %7 = vsyncpa [#allocation4], 0  ;;  %s91_s6 = smov [#allocation2]   ;;  %s43_s10 = scalar_lea.hbm %s128_s0, 128 }
   0x2   :  { %s14_s7 = sshll.u32 %s91_s6, 4  ;;  %p44_p0 = scmp.ne.s32.totalorder %s128_s0, %s43_s10  ;;  %s15_s7 = int_to_ptr.vmem [resolvable:$true] %s14_s7 }
   0x3   :  { %p47_p1 = scmp.lt.u32.totalorder %s43_s10, %s128_s0 }
   0x5   :  { %p49_p2 = pnand %p47_p1, %p44_p0 }
   0x7   :  { %52 = shalt.err (!%p49_p2)
}
   0x8   :  { %s53_s15 = scalar_lea.vmem %s15_s7, 128  ;;  %p58_p4 = scmp.lt.s32.totalorder %s15_s7, %s15_s7 }
   0x9   :  { %p54_p3 = scmp.ne.s32.totalorder %s15_s7, %s53_s15  ;;  %p59_p5 = scmp.lt.s32.totalorder %s53_s15, %s53_s15 }
   0xb   :  { %p60_p6 = por %p59_p5, %p58_p4 }
   0xd   :  { %p61_p7 = pnand %p60_p6, %p54_p3 }
   0xf   :  { %64 = shalt.err (!%p61_p7)
}
  0x10   :  { %17 = dma.hbm_to_vmem [thread:$0]  %s128_s0, 128, %s15_s7, [#allocation3]  }
  0x11   :  { %87 = dma.done.wait [#allocation3], 128  }
  0x12   :  { %88 = vsyncadd [#allocation3], 4294967168  ;;  %v21_v0 = vld [vmem:[#allocation2] sm:$0xff]  ;;  %s92_s18 = smov 1   ;;  %s93_s19 = smov [#allocation5]  }
  0x13   :  { %22 = vrot.lane.b32.xlu0 %v21_v0, %s92_s18  ;;  %s31_s20 = sshll.u32 %s93_s19, 4  ;;  %s32_s20 = int_to_ptr.vmem [resolvable:$true] %s31_s20 }
  0x14   :  { %s65_s21 = scalar_lea.vmem %s32_s20, 128  ;;  %p70_p9 = scmp.lt.s32.totalorder %s32_s20, %s32_s20 }
  0x15   :  { %p66_p8 = scmp.ne.s32.totalorder %s32_s20, %s65_s21  ;;  %p71_p10 = scmp.lt.s32.totalorder %s65_s21, %s65_s21 }
  0x17   :  { %p72_p11 = por %p71_p10, %p70_p9 }
  0x19   :  { %p73_p12 = pnand %p72_p11, %p66_p8 }
  0x85   :  { %v23_v1 = vpop.permute.xlu0 %22 }
  0x86   :  { %24 = vst [vmem:[#allocation5] sm:$0xff] %v23_v1 }
  0x87   :  { %76 = shalt.err (!%p73_p12)
}
  0x88   :  { %s77_s0 = scalar_lea.hbm %s129_s1, 128 }
  0x89   :  { %p78_p13 = scmp.ne.s32.totalorder %s129_s1, %s77_s0  ;;  %p81_p0 = scmp.lt.u32.totalorder %s77_s0, %s129_s1 }
  0x8b   :  { %p83_p1 = pnand %p81_p0, %p78_p13 }
  0x8d   :  { %86 = shalt.err (!%p83_p1)
}
  0x8e   :  { %34 = dma.vmem_to_hbm [thread:$0]  %s32_s20, 128, %s129_s1, [#allocation4]  }
  0x8f   :  { %89 = dma.done.wait [#allocation4], 128  }
  0x90   :  { %90 = vsyncadd [#allocation4], 4294967168 }
  0x91   :  { %38 = vsyncpa [#allocation3], 1 }
  0x92   :  { %39 = vsyncpa [#allocation4], 1 }

</bundles_post_ra>
